<compile_context>
chip_gen: v7x
topology: tpu7x:2x2x1
jax: 0.10.0
libtpu: 0.0.40
codegen_flags: <defaults>
</compile_context>

<pallas_src>
import functools

import jax
import jax.numpy as jnp
from jax import lax
from jax.experimental import pallas as pl
from jax.experimental.pallas import tpu as pltpu


def _round_up(x, m):
    return ((x + m - 1) // m) * m


def _on_tpu():
    try:
        return jax.devices()[0].platform == "tpu"
    except Exception:
        return False


def _default_compute_dtype():
    # bf16 MXU inputs on every TPU generation (tanh / bias adds / accumulation
    # stay f32 regardless); f32 fallback off-TPU.
    return jnp.bfloat16 if _on_tpu() else jnp.float32


def _is_v7x():
    try:
        dev = jax.devices()[0]
        if dev.platform != "tpu":
            return False
        kind = dev.device_kind.lower()
        return ("v7" in kind) or ("7x" in kind)
    except Exception:
        return False


def _autonovel_kernel(x_ref, w1_ref, b1_ref, wf_ref, bf_ref, out_ref, z_acc,
                      *, hidden):
    # x_ref : [TB, TK]   compute dtype         X tile (K slice)
    # w1_ref: [TK, HP]   compute dtype         head1 weight K slice ([in,out])
    # b1_ref: [1,  HP]   f32                   head1 bias row
    # wf_ref: [HP, NP]   compute dtype         fused [head2|classif1|classif2]
    # bf_ref: [1,  NP]   f32                   fused bias row
    # out_ref:[TB, NP]   out dtype             fused lane-dense output slab
    # z_acc : [TB, HP]   f32 scratch           head1 accumulator
    k = pl.program_id(1)

    @pl.when(k == 0)
    def _init():
        z_acc[...] = jnp.zeros_like(z_acc)

    # Partial-K head1 contribution; f32 accumulation on the MXU.
    z_acc[...] += jnp.dot(x_ref[...], w1_ref[...],
                          preferred_element_type=jnp.float32)

    @pl.when(k == pl.num_programs(1) - 1)
    def _finalize():
        z = jnp.tanh(z_acc[...] + b1_ref[...])                  # [TB, HP] f32
        # Fused second stage: one lane-dense matmul for head2+classif1+classif2.
        y = (jnp.dot(z.astype(wf_ref.dtype), wf_ref[...],
                     preferred_element_type=jnp.float32)
             + bf_ref[...])                                     # [TB, NP] f32
        # tanh only the head2 columns (first `hidden` lanes); classif stays linear.
        col = lax.broadcasted_iota(jnp.int32, y.shape, 1)
        out_ref[...] = jnp.where(col < hidden, jnp.tanh(y), y).astype(out_ref.dtype)


def autonovel_forward(x, params, compute_dtype=None, out_dtype=None):
    """x: [B, d] float32.  params: dict of (weight [out,in], bias [out]) per layer.

    Returns (out1 [B,NS], out2 [B,NU], out [B,H]) in float32.
    """
    B, d = x.shape
    H = params["head1_w"].shape[0]
    NS = params["classif1_w"].shape[0]
    NU = params["classif2_w"].shape[0]
    NF = H + NS + NU

    if compute_dtype is None:
        compute_dtype = _default_compute_dtype()
    compute_dtype = jnp.dtype(compute_dtype)
    if out_dtype is None:
        # bf16 output slab on TPU: halves the largest HBM stream; final
        # user-facing outputs are cast back to f32 below.
        out_dtype = (jnp.dtype(jnp.bfloat16)
                     if compute_dtype == jnp.dtype(jnp.bfloat16)
                     else jnp.dtype(jnp.float32))
    out_dtype = jnp.dtype(out_dtype)
    itemsize = compute_dtype.itemsize
    out_itemsize = out_dtype.itemsize

    # Lane-dense padded output/hidden dims (multiples of 128).
    HP = _round_up(H, 128)
    NP = _round_up(NF, 128)

    # ---- K (input-feature) tiling.  Small d: single un-padded K block (no
    # feature padding of X in HBM at all).  Large gene counts: TK=512 K-axis
    # grid so per-step X / w1 blocks stay within v7x's smaller VMEM. ----
    if d <= 1024:
        TK, DPAD = d, d
    else:
        TK = 512
        DPAD = _round_up(d, TK)
    nk = DPAD // TK

    # ---- Batch tiling: as large as a ~20 MiB per-step VMEM budget allows
    # (cap 4096), then re-balanced so batch padding is minimal. ----
    per_row_bytes = (TK * itemsize * 2          # X tile, double-buffered
                     + NP * out_itemsize * 2    # output tile, double-buffered
                     + HP * 4                   # z accumulator (f32 scratch)
                     + HP * 4 + NP * 4)         # z / y f32 temporaries
    budget = 20 * 1024 * 1024
    tb_max = max(256, min(4096, (budget // per_row_bytes) // 16 * 16))
    n_steps = max(1, -(-B // tb_max))
    TB = _round_up(-(-B // n_steps), 16)
    BP = TB * n_steps

    # ---- One-time weight prep (transpose [out,in] -> [in,out], zero-pad),
    # built directly in the compute dtype. ----
    w1 = jnp.zeros((DPAD, HP), compute_dtype).at[:d, :H].set(
        params["head1_w"].T.astype(compute_dtype))
    b1 = jnp.zeros((1, HP), jnp.float32).at[0, :H].set(params["head1_b"])

    wf = jnp.zeros((HP, NP), compute_dtype)
    wf = wf.at[:H, :H].set(params["head2_w"].T.astype(compute_dtype))
    wf = wf.at[:H, H:H + NS].set(params["classif1_w"].T.astype(compute_dtype))
    wf = wf.at[:H, H + NS:NF].set(params["classif2_w"].T.astype(compute_dtype))
    bf = jnp.zeros((1, NP), jnp.float32)
    bf = bf.at[0, :H].set(params["head2_b"])
    bf = bf.at[0, H:H + NS].set(params["classif1_b"])
    bf = bf.at[0, H + NS:NF].set(params["classif2_b"])

    # Pad + cast X in a SINGLE pass, directly in the compute dtype.
    if BP == B and DPAD == d:
        xp = x.astype(compute_dtype)
    else:
        xp = jnp.zeros((BP, DPAD), compute_dtype).at[:B, :d].set(
            x.astype(compute_dtype))

    # Grid semantics: batch axis parallel (CORE_PARALLEL on v7x so the second
    # TensorCore takes half the batch tiles), K reduction axis arbitrary.
    core_parallel = getattr(pltpu, "CORE_PARALLEL", None)
    if _is_v7x() and core_parallel is not None and n_steps % 2 == 0:
        dim_sem = (core_parallel, pltpu.ARBITRARY)
    else:
        dim_sem = ("parallel", "arbitrary")

    cost = pl.CostEstimate(
        flops=2 * B * (d * H + H * NF),
        transcendentals=2 * B * H,
        bytes_accessed=(BP * DPAD * itemsize + DPAD * HP * itemsize
                        + HP * NP * itemsize + BP * NP * out_itemsize
                        + (HP + NP) * 4),
    )

    kernel = functools.partial(_autonovel_kernel, hidden=H)

    # TODO(synk): weight/bias BlockSpecs could use pipeline_mode=pl.Buffered(1)
    # (constant index_maps) to drop their redundant second VMEM buffer.
    y = pl.pallas_call(
        kernel,
        out_shape=jax.ShapeDtypeStruct((BP, NP), out_dtype),
        grid=(n_steps, nk),
        in_specs=[
            pl.BlockSpec((TB, TK), lambda i, k: (i, k)),   # X: pipelined tiles
            pl.BlockSpec((TK, HP), lambda i, k: (k, 0)),   # head1 weight K slice
            pl.BlockSpec((1, HP), lambda i, k: (0, 0)),    # head1 bias (resident)
            pl.BlockSpec((HP, NP), lambda i, k: (0, 0)),   # fused weight (resident)
            pl.BlockSpec((1, NP), lambda i, k: (0, 0)),    # fused bias (resident)
        ],
        out_specs=pl.BlockSpec((TB, NP), lambda i, k: (i, 0)),
        scratch_shapes=[pltpu.VMEM((TB, HP), jnp.float32)],
        compiler_params=pltpu.CompilerParams(
            dimension_semantics=dim_sem,
            vmem_limit_bytes=48 * 1024 * 1024),
        cost_estimate=cost,
    )(xp, w1, b1, wf, bf)

    # Slice the fused padded slab back into the three module outputs (f32,
    # matching the PyTorch interface).
    out = y[:B, :H].astype(jnp.float32)
    out1 = y[:B, H:H + NS].astype(jnp.float32)
    out2 = y[:B, H + NS:NF].astype(jnp.float32)
    return out1, out2, out


def init_params(key, d, hidden, NS, NU):
    """Deterministic init mimicking nn.Linear shapes: weight [out, in], bias [out]."""
    ks = jax.random.split(key, 8)

    def lin(kw, kb, fan_in, fan_out):
        bound = 1.0 / jnp.sqrt(jnp.float32(fan_in))
        w = jax.random.uniform(kw, (fan_out, fan_in), jnp.float32, -bound, bound)
        b = jax.random.uniform(kb, (fan_out,), jnp.float32, -bound, bound)
        return w, b

    p = {}
    p["head1_w"], p["head1_b"] = lin(ks[0], ks[1], d, hidden)
    p["head2_w"], p["head2_b"] = lin(ks[2], ks[3], hidden, hidden)
    p["classif1_w"], p["classif1_b"] = lin(ks[4], ks[5], hidden, NS)
    p["classif2_w"], p["classif2_b"] = lin(ks[6], ks[7], hidden, NU)
    return p


def reference_forward(x, params):
    """Pure-JAX reference matching the PyTorch forward exactly."""
    z = jnp.tanh(x @ params["head1_w"].T + params["head1_b"])
    out = jnp.tanh(z @ params["head2_w"].T + params["head2_b"])
    out1 = z @ params["classif1_w"].T + params["classif1_b"]
    out2 = z @ params["classif2_w"].T + params["classif2_b"]
    return out1, out2, out


if __name__ == "__main__":
    # Small shapes consistent with Autonovel defaults (d=50, hidden=50, NS=25, NU=25).
    B, d, hidden, NS, NU = 8, 50, 50, 25, 25

    key = jax.random.PRNGKey(0)
    kx, kp = jax.random.split(key)
    x = jax.random.normal(kx, (B, d), jnp.float32)
    params = init_params(kp, d, hidden, NS, NU)

    compute_dtype = _default_compute_dtype()
    out1, out2, out = autonovel_forward(x, params, compute_dtype=compute_dtype)
    jax.block_until_ready((out1, out2, out))

    r1, r2, r = reference_forward(x, params)
    assert out1.shape == (B, NS) and out2.shape == (B, NU) and out.shape == (B, hidden)

    if jnp.dtype(compute_dtype) == jnp.dtype(jnp.bfloat16):
        atol, rtol = 5e-2, 1e-2   # bf16 MXU inputs / bf16 output slab, f32 accum
    else:
        atol, rtol = 1e-5, 1e-5   # full f32 path (non-TPU fallback)

    assert jnp.allclose(out1, r1, atol=atol, rtol=rtol), "out1 mismatch"
    assert jnp.allclose(out2, r2, atol=atol, rtol=rtol), "out2 mismatch"
    assert jnp.allclose(out, r, atol=atol, rtol=rtol), "out mismatch"

    print("KERNEL_OK")
</pallas_src>

<mosaic_0001>
module attributes {stable_mosaic.version = 11 : i64} {
  func.func @_autonovel_kernel(%arg0: i32, %arg1: i32, %arg2: memref<16x50xf32, #tpu.memory_space<vmem>>, %arg3: memref<50x128xf32, #tpu.memory_space<vmem>>, %arg4: memref<1x128xf32, #tpu.memory_space<vmem>>, %arg5: memref<128x128xf32, #tpu.memory_space<vmem>>, %arg6: memref<1x128xf32, #tpu.memory_space<vmem>>, %arg7: memref<16x128xf32, #tpu.memory_space<vmem>>, %arg8: memref<16x128xf32, #tpu.memory_space<vmem>>) attributes {dimension_semantics = [#tpu.dimension_semantics<parallel>, #tpu.dimension_semantics<arbitrary>], iteration_bounds = array<i64: 1, 1>, scalar_prefetch = 0 : i64, scratch_operands = 1 : i64, tpu.core_type = #tpu.core_type<tc>, window_params = [{transform_indices = @transform_0, window_bounds = array<i64: 16, 50>}, {transform_indices = @transform_1, window_bounds = array<i64: 50, 128>}, {pipeline_mode = #tpu.pipeline_mode<synchronous>, transform_indices = @transform_2, window_bounds = array<i64: 1, 128>}, {pipeline_mode = #tpu.pipeline_mode<synchronous>, transform_indices = @transform_3, window_bounds = array<i64: 128, 128>}, {pipeline_mode = #tpu.pipeline_mode<synchronous>, transform_indices = @transform_4, window_bounds = array<i64: 1, 128>}, {transform_indices = @transform_5, window_bounds = array<i64: 16, 128>}]} {
    %c0_i32 = arith.constant 0 : i32
    %0 = arith.cmpi eq, %arg1, %c0_i32 : i32
    %1 = arith.extui %0 : i1 to i32
    %c0_i32_0 = arith.constant 0 : i32
    %2 = arith.cmpi ne, %1, %c0_i32_0 : i32
    scf.if %2 {
      %cst_10 = arith.constant 0.000000e+00 : f32
      %12 = vector.broadcast %cst_10 : f32 to vector<16x128xf32>
      %c0_11 = arith.constant 0 : index
      %c0_12 = arith.constant 0 : index
      %13 = vector.load %arg8[%c0_11, %c0_12] : memref<16x128xf32, #tpu.memory_space<vmem>>, vector<16x128xf32>
      tpu.vector_store %arg8[%c0_11, %c0_12], %12 {strides = array<i32>} : memref<16x128xf32, #tpu.memory_space<vmem>>, vector<16x128xf32>,
    } else {
    }
    %c0 = arith.constant 0 : index
    %c0_1 = arith.constant 0 : index
    %3 = vector.load %arg8[%c0, %c0_1] : memref<16x128xf32, #tpu.memory_space<vmem>>, vector<16x128xf32>
    %c0_2 = arith.constant 0 : index
    %c0_3 = arith.constant 0 : index
    %4 = vector.load %arg2[%c0_2, %c0_3] : memref<16x50xf32, #tpu.memory_space<vmem>>, vector<16x50xf32>
    %c0_4 = arith.constant 0 : index
    %c0_5 = arith.constant 0 : index
    %5 = vector.load %arg3[%c0_4, %c0_5] : memref<50x128xf32, #tpu.memory_space<vmem>>, vector<50x128xf32>
    %cst = arith.constant dense<0.000000e+00> : vector<16x128xf32>
    %6 = tpu.matmul %4, %5, %cst {dimension_numbers = #tpu.dot_dimension_numbers<[1], [0], [0], [1], [0, 0, 1, 1], [], []>} : vector<16x50xf32>, vector<50x128xf32>, vector<16x128xf32> -> vector<16x128xf32>
    %7 = arith.addf %3, %6 : vector<16x128xf32>
    %c0_6 = arith.constant 0 : index
    %c0_7 = arith.constant 0 : index
    %8 = vector.load %arg8[%c0_6, %c0_7] : memref<16x128xf32, #tpu.memory_space<vmem>>, vector<16x128xf32>
    tpu.vector_store %arg8[%c0_6, %c0_7], %7 {strides = array<i32>} : memref<16x128xf32, #tpu.memory_space<vmem>>, vector<16x128xf32>,
    %c0_i32_8 = arith.constant 0 : i32
    %9 = arith.cmpi eq, %arg1, %c0_i32_8 : i32
    %10 = arith.extui %9 : i1 to i32
    %c0_i32_9 = arith.constant 0 : i32
    %11 = arith.cmpi ne, %10, %c0_i32_9 : i32
    scf.if %11 {
      %c0_10 = arith.constant 0 : index
      %c0_11 = arith.constant 0 : index
      %12 = vector.load %arg8[%c0_10, %c0_11] : memref<16x128xf32, #tpu.memory_space<vmem>>, vector<16x128xf32>
      %c0_12 = arith.constant 0 : index
      %c0_13 = arith.constant 0 : index
      %13 = vector.load %arg4[%c0_12, %c0_13] : memref<1x128xf32, #tpu.memory_space<vmem>>, vector<1x128xf32>
      %14 = vector.broadcast %13 : vector<1x128xf32> to vector<16x128xf32>
      %15 = arith.addf %12, %14 : vector<16x128xf32>
      %16 = math.tanh %15 : vector<16x128xf32>
      %c0_14 = arith.constant 0 : index
      %c0_15 = arith.constant 0 : index
      %17 = vector.load %arg5[%c0_14, %c0_15] : memref<128x128xf32, #tpu.memory_space<vmem>>, vector<128x128xf32>
      %cst_16 = arith.constant dense<0.000000e+00> : vector<16x128xf32>
      %18 = tpu.matmul %16, %17, %cst_16 {dimension_numbers = #tpu.dot_dimension_numbers<[1], [0], [0], [1], [0, 0, 1, 1], [], []>} : vector<16x128xf32>, vector<128x128xf32>, vector<16x128xf32> -> vector<16x128xf32>
      %c0_17 = arith.constant 0 : index
      %c0_18 = arith.constant 0 : index
      %19 = vector.load %arg6[%c0_17, %c0_18] : memref<1x128xf32, #tpu.memory_space<vmem>>, vector<1x128xf32>
      %20 = vector.broadcast %19 : vector<1x128xf32> to vector<16x128xf32>
      %21 = arith.addf %18, %20 : vector<16x128xf32>
      %22 = tpu.iota {dimensions = array<i32: 1>} : vector<16x128xi32>
      %c50_i32 = arith.constant 50 : i32
      %23 = vector.broadcast %c50_i32 : i32 to vector<16x128xi32>
      %24 = arith.cmpi slt, %22, %23 : vector<16x128xi32>
      %25 = math.tanh %21 : vector<16x128xf32>
      %26 = arith.select %24, %25, %21 : vector<16x128xi1>, vector<16x128xf32>
      %c0_19 = arith.constant 0 : index
      %c0_20 = arith.constant 0 : index
      %27 = vector.load %arg7[%c0_19, %c0_20] : memref<16x128xf32, #tpu.memory_space<vmem>>, vector<16x128xf32>
      tpu.vector_store %arg7[%c0_19, %c0_20], %26 {strides = array<i32>} : memref<16x128xf32, #tpu.memory_space<vmem>>, vector<16x128xf32>,
    } else {
    }
    return
  }
  func.func @transform_0(%arg0: i32, %arg1: i32) -> (i32, i32) {
    %c0_i32 = arith.constant 0 : i32
    return %arg0, %arg1 : i32, i32
  }
  func.func @transform_1(%arg0: i32, %arg1: i32) -> (i32, i32) {
    %c0_i32 = arith.constant 0 : i32
    %c0_i32_0 = arith.constant 0 : i32
    return %arg1, %c0_i32 : i32, i32
  }
  func.func @transform_2(%arg0: i32, %arg1: i32) -> (i32, i32) {
    %c0_i32 = arith.constant 0 : i32
    %c0_i32_0 = arith.constant 0 : i32
    %c0_i32_1 = arith.constant 0 : i32
    return %c0_i32, %c0_i32_0 : i32, i32
  }
  func.func @transform_3(%arg0: i32, %arg1: i32) -> (i32, i32) {
    %c0_i32 = arith.constant 0 : i32
    %c0_i32_0 = arith.constant 0 : i32
    %c0_i32_1 = arith.constant 0 : i32
    return %c0_i32, %c0_i32_0 : i32, i32
  }
  func.func @transform_4(%arg0: i32, %arg1: i32) -> (i32, i32) {
    %c0_i32 = arith.constant 0 : i32
    %c0_i32_0 = arith.constant 0 : i32
    %c0_i32_1 = arith.constant 0 : i32
    return %c0_i32, %c0_i32_0 : i32, i32
  }
  func.func @transform_5(%arg0: i32, %arg1: i32) -> (i32, i32) {
    %c0_i32 = arith.constant 0 : i32
    %c0_i32_0 = arith.constant 0 : i32
    return %arg0, %c0_i32 : i32, i32
  }
}

</mosaic_0001>

<bundles_post_ra>
// kernel: tpu_custom_call.1
= control target key start
LH: loop header
LB: loop body
LE: loop exit
PB: predicated region body
PF: predicated region fallthrough
CT: control target
= control target key end

     0   :  { %10 = vsyncpa [#allocation4], 0  ;;  %s657_s0 = inlined_call_operand.hbm [shape: f32[16,50], index: 0, kind: input, shape index: {}]   ;;  %s658_s1 = inlined_call_operand.hbm [shape: f32[50,128], index: 1, kind: input, shape index: {}]   ;;  %s659_s2 = inlined_call_operand.vmem [shape: f32[1,128], index: 2, kind: input, shape index: {}]   ;;  %s660_s3 = inlined_call_operand.hbm [shape: f32[128,128], index: 3, kind: input, shape index: {}]   ;;  %s661_s4 = inlined_call_operand.vmem [shape: f32[1,128], index: 4, kind: input, shape index: {}]   ;;  %s662_s5 = inlined_call_operand.hbm [shape: f32[16,128], index: 5, kind: output, shape index: {}]  }
   0x1   :  { %11 = vsyncpa [#allocation7], 0 }
   0x2   :  { %12 = vsyncpa [#allocation5], 0  ;;  %s546_s18 = smov [#allocation6]   ;;  %s547_s20 = smov [#allocation3]  }
   0x3   :  { %s30_s19 = sshll.u32 %s546_s18, 4  ;;  %s18_s21 = sshll.u32 %s547_s20, 4  ;;  %s31_s19 = int_to_ptr.vmem [resolvable:$true] %s30_s19  ;;  %s582_s21 = int_to_ptr.vmem [resolvable:$true] %s18_s21 }
   0x4   :  { %s452_s24 = scalar_lea.hbm %s658_s1, 896 }
   0x5   :  { %p453_p0 = scmp.ne.s32.totalorder %s658_s1, %s452_s24  ;;  %p456_p1 = scmp.lt.u32.totalorder %s452_s24, %s658_s1 }
   0x7   :  { %p458_p2 = pnand %p456_p1, %p453_p0 }
   0x9   :  { %461 = shalt.err (!%p458_p2)
}
   0xa   :  { %s462_s29 = scalar_lea.vmem %s31_s19, 896  ;;  %p467_p4 = scmp.lt.s32.totalorder %s31_s19, %s31_s19 }
   0xb   :  { %p463_p3 = scmp.ne.s32.totalorder %s31_s19, %s462_s29  ;;  %p468_p5 = scmp.lt.s32.totalorder %s462_s29, %s462_s29 }
   0xd   :  { %p469_p6 = por %p468_p5, %p467_p4 }
   0xf   :  { %p470_p7 = pnand %p469_p6, %p463_p3 }
  0x11   :  { %473 = shalt.err (!%p470_p7)
}
  0x12   :  { %s548_s30 = smov 128   ;;  %s549_s6 = smov 8  }
  0x13   :  { %36 = dma.hbm_to_vmem [thread:$0]  %s658_s1, 896, %s31_s19, [#allocation7], %s548_s30, %s548_s30, %s549_s6  }
  0x14   :  { %s474_s11 = scalar_lea.hbm %s657_s0, 256 }
  0x15   :  { %p475_p8 = scmp.ne.s32.totalorder %s657_s0, %s474_s11  ;;  %p478_p9 = scmp.lt.u32.totalorder %s474_s11, %s657_s0 }
  0x17   :  { %p480_p10 = pnand %p478_p9, %p475_p8 }
  0x19   :  { %483 = shalt.err (!%p480_p10)
}
  0x1a   :  { %s484_s16 = scalar_lea.vmem %s582_s21, 256  ;;  %p489_p12 = scmp.lt.s32.totalorder %s582_s21, %s582_s21 }
  0x1b   :  { %p485_p11 = scmp.ne.s32.totalorder %s582_s21, %s484_s16  ;;  %p490_p13 = scmp.lt.s32.totalorder %s484_s16, %s484_s16 }
  0x1d   :  { %p491_p0 = por %p490_p13, %p489_p12 }
  0x1f   :  { %p492_p1 = pnand %p491_p0, %p485_p11 }
  0x21   :  { %495 = shalt.err (!%p492_p1)
}
  0x22   :  { %24 = dma.hbm_to_vmem [thread:$0]  %s657_s0, 256, %s582_s21, [#allocation4], %s548_s30, %s548_s30, %s549_s6  }
  0x23   :  { %s550_s18 = smov [#allocation8]   ;;  %s496_s23 = scalar_lea.hbm %s660_s3, 2048 }
  0x24   :  { %s44_s19 = sshll.u32 %s550_s18, 4  ;;  %p497_p2 = scmp.ne.s32.totalorder %s660_s3, %s496_s23  ;;  %s45_s19 = int_to_ptr.vmem [resolvable:$true] %s44_s19 }
  0x25   :  { %p500_p3 = scmp.lt.u32.totalorder %s496_s23, %s660_s3 }
  0x27   :  { %p502_p4 = pnand %p500_p3, %p497_p2 }
  0x29   :  { %505 = shalt.err (!%p502_p4)
}
  0x2a   :  { %s506_s28 = scalar_lea.vmem %s45_s19, 2048  ;;  %p511_p6 = scmp.lt.s32.totalorder %s45_s19, %s45_s19 }
  0x2b   :  { %p507_p5 = scmp.ne.s32.totalorder %s45_s19, %s506_s28  ;;  %p512_p7 = scmp.lt.s32.totalorder %s506_s28, %s506_s28 }
  0x2d   :  { %p513_p8 = por %p512_p7, %p511_p6 }
  0x2f   :  { %p514_p9 = pnand %p513_p8, %p507_p5 }
  0x31   :  { %517 = shalt.err (!%p514_p9)
}
  0x32   :  { %50 = dma.hbm_to_vmem [thread:$0]  %s660_s3, 2048, %s45_s19, [#allocation7], %s548_s30, %s548_s30, %s549_s6  }
  0x33   :  { %540 = dma.done.wait [#allocation4], 256  }
  0x34   :  { %541 = vsyncadd [#allocation4], 4294967040 }
  0x35   :  { %542 = dma.done.wait [#allocation7], 2944  }
  0x36   :  { %543 = vsyncadd [#allocation7], 4294964352  ;;  %v72_v0 = vld [vmem:[#allocation6] sm:$0xff]  ;;  %v73_v1 = vld [vmem:[#allocation6 + $0x8] sm:$0xff]  ;;  %vm79_vm0 = vcmask 408576   ;;  %vm86_vm1 = vcmask 1041408   ;;  %v283_v48 = vlaneseq }
  0x37   :  { %v74_v2 = vld [vmem:[#allocation6 + $0x10] sm:$0xff]  ;;  %v394_v3 = vpack.c.bf16 %v73_v1, %v72_v0  ;;  %v75_v4 = vld [vmem:[#allocation6 + $0x18] sm:$0xff]  ;;  %v76_v6 = vld [vmem:[#allocation6 + $0x20] sm:$0xff] }
  0x38   :  { %v398_v5 = vpack.c.bf16 %v75_v4, %v74_v2  ;;  %v77_v7 = vld [vmem:[#allocation6 + $0x28] sm:$0xff]  ;;  %v70_v8 = vld [vmem:[#allocation3] sm:$0xff]  ;;  %v185_v9 = vld [vmem:[#allocation8] sm:$0xff]  ;;  %v284_v49 = vand.u32 127, %v283_v48 }
  0x39   :  { %395 = vmatprep.subr.bf16.mxu0 %v394_v3  ;;  %356 = vmatprep.mubr.msk.f32.mxu0 %vm79_vm0, %v70_v8  ;;  %v186_v10 = vld [vmem:[#allocation8 + $0x8] sm:$0xff]  ;;  %v187_v11 = vld [vmem:[#allocation8 + $0x10] sm:$0xff]  ;;  %v188_v13 = vld [vmem:[#allocation8 + $0x18] sm:$0xff]  ;;  %v402_v14 = vpack.c.bf16 %v77_v7, %v76_v6 }
  0x3a   :  { %397 = vmatpush3.bf16.msra.mxu0 %v394_v3  ;;  %v406_v12 = vpack.c.bf16 %v186_v10, %v185_v9  ;;  %v410_v15 = vpack.c.bf16 %v188_v13, %v187_v11  ;;  %v189_v16 = vld [vmem:[#allocation8 + $0x20] sm:$0xff]  ;;  %v190_v17 = vld [vmem:[#allocation8 + $0x28] sm:$0xff]  ;;  %v191_v19 = vld [vmem:[#allocation8 + $0x30] sm:$0xff]  ;;  %vm285_vm2 = vcmp.lt.s32.totalorder %v284_v49, 50 }
  0x3b   :  { %399 = vmatprep.subr.bf16.mxu0 %v398_v5  ;;  %v414_v18 = vpack.c.bf16 %v190_v17, %v189_v16  ;;  %v192_v20 = vld [vmem:[#allocation8 + $0x38] sm:$0xff]  ;;  %v71_v23 = vld [vmem:[#allocation3 + $0x8] sm:$0xff]  ;;  %v194_v25 = vld [vmem:[#allocation8 + $0x48] sm:$0xff] }
  0x3c   :  { %407 = vmatprep.subr.bf16.mxu1 %v406_v12  ;;  %v78_v21 = vld [vmem:[#allocation6 + $0x30] sm:$0x3]  ;;  %v418_v22 = vpack.c.bf16 %v192_v20, %v191_v19  ;;  %v193_v24 = vld [vmem:[#allocation8 + $0x40] sm:$0xff]  ;;  %v195_v27 = vld [vmem:[#allocation8 + $0x50] sm:$0xff] }
  0x3d   :  { %409 = vmatpush3.bf16.msra.mxu1 %v406_v12  ;;  %v422_v26 = vpack.c.bf16 %v194_v25, %v193_v24  ;;  %v196_v28 = vld [vmem:[#allocation8 + $0x58] sm:$0xff]  ;;  %v197_v30 = vld [vmem:[#allocation8 + $0x60] sm:$0xff]  ;;  %v198_v31 = vld [vmem:[#allocation8 + $0x68] sm:$0xff] }
  0x3e   :  { %401 = vmatpush3.bf16.msra.mxu0 %v398_v5  ;;  %411 = vmatprep.subr.bf16.mxu1 %v410_v15  ;;  %v426_v29 = vpack.c.bf16 %v196_v28, %v195_v27  ;;  %v199_v32 = vld [vmem:[#allocation8 + $0x70] sm:$0xff]  ;;  %v430_v33 = vpack.c.bf16 %v198_v31, %v197_v30  ;;  %v200_v34 = vld [vmem:[#allocation8 + $0x78] sm:$0xff] }
  0x3f   :  { %403 = vmatprep.subr.bf16.mxu0 %v402_v14  ;;  %v434_v35 = vpack.c.bf16 %v200_v34, %v199_v32  ;;  %v313_v36 = vld [vmem:[%s659_s2] ss:$0 sm:$0xff]  ;;  %s551_s2 = smov [#allocation9]  }
  0x40   :  { %v314_v43 = vld [vmem:[%s661_s4] ss:$0 sm:$0xff]  ;;  %s297_s9 = sshll.u32 %s551_s2, 4  ;;  %s298_s9 = int_to_ptr.vmem [resolvable:$true] %s297_s9 }
  0x41   :  { %413 = vmatpush3.bf16.msra.mxu1 %v410_v15  ;;  %s518_s10 = scalar_lea.vmem %s298_s9, 256  ;;  %p523_p11 = scmp.lt.s32.totalorder %s298_s9, %s298_s9 }
  0x42   :  { %405 = vmatpush3.bf16.msra.mxu0 %v402_v14  ;;  %415 = vmatprep.subr.bf16.mxu1 %v414_v18  ;;  %p519_p10 = scmp.ne.s32.totalorder %s298_s9, %s518_s10  ;;  %p524_p12 = scmp.lt.s32.totalorder %s518_s10, %s518_s10 }
  0x43   :  { %354 = vmatprep.subr.msk.mxu0 %vm86_vm1, %v78_v21 }
  0x44   :  { %p525_p13 = por %p524_p12, %p523_p11 }
  0x45   :  { %417 = vmatpush3.bf16.msra.mxu1 %v414_v18 }
  0x46   :  { %355 = vmatpush3.msk.msra.mxu0 %vm86_vm1, %v78_v21  ;;  %419 = vmatprep.subr.bf16.mxu1 %v418_v22  ;;  %p526_p0 = pnand %p525_p13, %p519_p10 }
  0x47   :  { %357 = vmatmul.mubr.msk.f32.vlgmr.msra.gmra.mrb[0].mxu0 %vm79_vm0, %v71_v23 }
  0x49   :  { %421 = vmatpush3.bf16.msra.mxu1 %v418_v22 }
  0x4a   :  { %423 = vmatprep.subr.bf16.mxu1 %v422_v26 }
  0x4d   :  { %425 = vmatpush3.bf16.msra.mxu1 %v422_v26 }
  0x4e   :  { %427 = vmatprep.subr.bf16.mxu1 %v426_v29 }
  0x51   :  { %429 = vmatpush3.bf16.msra.mxu1 %v426_v29 }
  0x52   :  { %431 = vmatprep.subr.bf16.mxu1 %v430_v33 }
  0x55   :  { %433 = vmatpush3.bf16.msra.mxu1 %v430_v33 }
  0x56   :  { %435 = vmatprep.subr.bf16.mxu1 %v434_v35 }
  0x59   :  { %437 = vmatpush3.bf16.msra.mxu1 %v434_v35 }
 0x11a   :  { %v358_v37 = vpop.f32.mrb[0].mxu0 }
 0x11b   :  { %v182_v38 = vadd.f32 %v358_v37, %v313_v36  ;;  %v156_v39 = vpop.f32.mrb[1].mxu0 }
 0x11c   :  { %v181_v40 = vadd.f32 %v313_v36, %v156_v39 }
 0x11e   :  { %444 = vtanh.f32 %v181_v40 }
 0x11f   :  { %446 = vtanh.f32 %v182_v38 }
 0x128   :  { %v445_v41 = vpop.eup %444 }
 0x129   :  { %v447_v42 = vpop.eup %446  ;;  %391 = vmatprep.mubr.f32.mxu1 %v445_v41 }
 0x12a   :  { %392 = vmatmul.mubr.f32.vlgmr.msra.gmra.mrb[0].mxu1 %v447_v42 }
 0x1fd   :  { %v393_v44 = vpop.f32.mrb[0].mxu1 }
 0x1fe   :  { %v280_v45 = vadd.f32 %v393_v44, %v314_v43  ;;  %v274_v46 = vpop.f32.mrb[1].mxu1 }
 0x1ff   :  { %v275_v47 = vadd.f32 %v314_v43, %v274_v46 }
 0x200   :  { %448 = vtanh.f32 %v280_v45 }
 0x201   :  { %450 = vtanh.f32 %v275_v47 }
 0x20a   :  { %v449_v50 = vpop.eup %448 }
 0x20b   :  { %v451_v51 = vpop.eup %450  ;;  %v289_v52 = vsel %vm285_vm2, %v449_v50, %v280_v45 }
 0x20c   :  { %v288_v53 = vsel %vm285_vm2, %v451_v51, %v275_v47  ;;  %291 = vst [vmem:[#allocation9 + $0x8] sm:$0xff] %v289_v52 }
 0x20d   :  { %290 = vst [vmem:[#allocation9] sm:$0xff] %v288_v53 }
 0x20e   :  { %529 = shalt.err (!%p526_p0)
}
 0x20f   :  { %s530_s12 = scalar_lea.hbm %s662_s5, 256 }
 0x210   :  { %p531_p1 = scmp.ne.s32.totalorder %s662_s5, %s530_s12  ;;  %p534_p2 = scmp.lt.u32.totalorder %s530_s12, %s662_s5 }
 0x212   :  { %p536_p3 = pnand %p534_p2, %p531_p1 }
 0x214   :  { %539 = shalt.err (!%p536_p3)
}
 0x215   :  { %303 = dma.vmem_to_hbm [thread:$0]  %s298_s9, 256, %s662_s5, [#allocation5], %s548_s30, %s548_s30, %s549_s6  }
 0x216   :  { %544 = dma.done.wait [#allocation5], 256  }
 0x217   :  { %545 = vsyncadd [#allocation5], 4294967040 }
 0x218   :  { %307 = vsyncpa [#allocation4], 1 }
 0x219   :  { %308 = vsyncpa [#allocation7], 1 }
 0x21a   :  { %309 = vsyncpa [#allocation5], 1 }

</bundles_post_ra>
